<compile_context>
chip_gen: v5e
topology: v5e:2x2
jax: 0.10.0
libtpu: 0.0.40
codegen_flags: <defaults>
</compile_context>

<pallas_src>
import functools

import jax
import jax.numpy as jnp
from jax.experimental import pallas as pl
from jax.experimental.pallas import tpu as pltpu


def _attentive_pool_kernel(emb_ref, mask_ref, w1_ref, b1_ref, w2t_ref, out_ref):
    # emb_ref:  (TB, L, D)   mask_ref: (TB, L) int32
    # w1_ref:   (D, Q)       b1_ref:   (1, Q)
    # w2t_ref:  (1, Q)       out_ref:  (TB, D)
    tb, seq_len, d_model = emb_ref.shape

    emb = emb_ref[...]                                             # (TB, L, D)

    # linear1 + tanh over all TB*L tokens in a single MXU pass.
    tokens = emb.reshape(tb * seq_len, d_model)                    # (TB*L, D)
    h = jnp.tanh(
        jnp.dot(tokens, w1_ref[...], preferred_element_type=jnp.float32)
        + b1_ref[...])                                             # (TB*L, Q)

    # linear2 (output width 1): VPU multiply + lane reduce on the FLAT layout.
    # Only the tiny score vector gets reshaped to (TB, L), so an L that is not
    # a multiple of 8 never forces a relayout of the big (TB*L, Q) buffer.
    scores = jnp.sum(h * w2t_ref[...], axis=-1)                    # (TB*L,)
    scores = scores.reshape(tb, seq_len)                           # (TB, L)

    # masked_fill(~mask, -inf)   (b2 omitted: softmax is shift-invariant).
    scores = jnp.where(mask_ref[...] > 0, scores, -jnp.inf)        # (TB, L)

    # Softmax over L (lane reductions), unnormalized weights.
    # NOTE: a fully-masked row yields NaN — same as the PyTorch reference.
    m = jnp.max(scores, axis=-1, keepdims=True)                    # (TB, 1)
    e = jnp.exp(scores - m)                                        # (TB, L)
    denom = jnp.sum(e, axis=-1, keepdims=True)                     # (TB, 1)

    # Weighted sum over the sequence on the VPU/XLU (NOT a batched M=1 MXU
    # matmul, which would issue ~TB tiny matmuls): lane-broadcast e across D,
    # sublane-reduce over L.
    pooled = jnp.sum(e[:, :, None] * emb, axis=1)                  # (TB, D)

    # Deferred, exact normalization (TB-element reciprocal — negligible).
    out_ref[...] = (pooled * pl.reciprocal(denom)).astype(out_ref.dtype)


def _round_up(x, m):
    return ((x + m - 1) // m) * m


def _vmem_limit_bytes():
    """Per-generation scoped-VMEM limit: 80% of physical, capped at 100 MiB."""
    cap = 64 * 1024 * 1024                      # assume v7x (smallest) if query fails
    try:
        info = pltpu.get_tpu_info()
        cap = int(getattr(info, "vmem_capacity_bytes", cap)) or cap
    except Exception:
        pass
    return min(int(cap * 0.8), 100 * 1024 * 1024)


def _auto_tile(batch, seq_len, d_model, itemsize, vmem_limit):
    """Batch-tile rows targeting a ~6 MiB embedding block (multiple of 8)."""
    bytes_per_row = seq_len * d_model * itemsize
    target_block_bytes = 6 * 1024 * 1024                      # 4-8 MiB sweet spot
    tb = max(8, (target_block_bytes // bytes_per_row) // 8 * 8)
    # Keep the double-buffered emb tile + f32 transients (weighted-sum product,
    # h, output tiles) comfortably inside the scoped-VMEM budget.
    tb_cap = max(8, ((vmem_limit // 4) // bytes_per_row) // 8 * 8)
    tb = min(tb, tb_cap)
    if batch <= tb:
        # Whole batch fits one step; split into 2 steps when worthwhile so the
        # two v7x TensorCores ("parallel" axis) both get work.
        if batch >= 16:
            return min(tb, _round_up(-(-batch // 2), 8))
        return batch
    return tb


@functools.partial(jax.jit, static_argnames=("block_b",))
def attentive_pooling(embedding, attention_mask, w1, b1, w2, b2=None, *,
                      block_b=None):
    """embedding: f32[B, L, D]; attention_mask: bool[B, L] -> f32[B, D]."""
    del b2  # Adding a constant to every score before softmax is a no-op.
    B, L, D = embedding.shape
    Q = w1.shape[1]

    emb = embedding.astype(jnp.float32)
    mask_i = attention_mask.astype(jnp.int32)

    vmem_limit = _vmem_limit_bytes()
    if block_b is None:
        tb = _auto_tile(B, L, D, emb.dtype.itemsize, vmem_limit)
    else:
        tb = B if block_b >= B else max(8, (block_b // 8) * 8)

    grid_b = pl.cdiv(B, tb)
    b_pad = grid_b * tb
    if b_pad != B:
        # Pad ONLY the tiny mask (marking the ragged tail "valid" keeps its
        # discarded rows well-defined).  The embedding and the output stay
        # unpadded: the last block is partial, its OOB rows are never written
        # back, and every row's computation is independent of other rows.
        mask_i = jnp.pad(mask_i, ((0, b_pad - B), (0, 0)), constant_values=1)

    w1_f = w1.astype(jnp.float32)
    b1_f = b1.reshape(1, Q).astype(jnp.float32)
    w2t = w2.reshape(1, Q).astype(jnp.float32)        # (Q, 1) -> (1, Q) row

    return pl.pallas_call(
        _attentive_pool_kernel,
        out_shape=jax.ShapeDtypeStruct((B, D), jnp.float32),
        grid_spec=pltpu.PrefetchScalarGridSpec(
            num_scalar_prefetch=0,
            grid=(grid_b,),
            in_specs=[
                # Default double-buffering; with multi-MiB tiles exposed DMA is
                # not expected (bump to pl.Buffered(3) only if a trace shows it).
                pl.BlockSpec((tb, L, D), lambda i: (i, 0, 0)),   # embedding
                pl.BlockSpec((tb, L), lambda i: (i, 0)),         # mask
                pl.BlockSpec((D, Q), lambda i: (0, 0)),          # W1
                pl.BlockSpec((1, Q), lambda i: (0, 0)),          # b1
                pl.BlockSpec((1, Q), lambda i: (0, 0)),          # W2^T
            ],
            out_specs=pl.BlockSpec((tb, D), lambda i: (i, 0)),
        ),
        compiler_params=pltpu.CompilerParams(
            dimension_semantics=("parallel",),
            vmem_limit_bytes=vmem_limit,
        ),
    )(emb, mask_i, w1_f, b1_f, w2t)


def _reference(embedding, attention_mask, w1, b1, w2, b2):
    # Pure-JAX reference of the PyTorch forward pass.
    attn = jnp.tanh(embedding @ w1 + b1)                          # (B, L, Q)
    attn = (attn @ w2 + b2)[..., 0]                               # (B, L)
    attn = jnp.where(attention_mask, attn, -jnp.inf)
    attn = jax.nn.softmax(attn, axis=1)                           # (B, L)
    return jnp.einsum("bl,bld->bd", attn, embedding)              # (B, D)


if __name__ == "__main__":
    L, D, Q = 8, 128, 32  # title_length, embed_dim, query_dim

    key = jax.random.PRNGKey(0)
    k_emb, k_w1, k_b1, k_w2, k_b2, k_emb2 = jax.random.split(key, 6)

    # PyTorch Linear stores (out, in); generate already-transposed (in, out).
    w1 = jax.random.normal(k_w1, (D, Q), dtype=jnp.float32) * 0.1
    b1 = jax.random.normal(k_b1, (1, Q), dtype=jnp.float32) * 0.1
    w2 = jax.random.normal(k_w2, (Q, 1), dtype=jnp.float32) * 0.1
    b2 = jax.random.normal(k_b2, (1, 1), dtype=jnp.float32) * 0.1

    # Case 1: small batch, single grid step (auto tile = whole batch).
    B = 4
    embedding = jax.random.normal(k_emb, (B, L, D), dtype=jnp.float32)
    lengths = jnp.array([[L], [5], [L], [1]])
    attention_mask = jnp.arange(L)[None, :] < lengths               # bool (B, L)

    out = jax.block_until_ready(
        attentive_pooling(embedding, attention_mask, w1, b1, w2, b2))
    ref = _reference(embedding, attention_mask, w1, b1, w2, b2)
    assert out.shape == (B, D)
    assert not bool(jnp.any(jnp.isnan(out))), "NaN in kernel output"
    assert jnp.allclose(out, ref, atol=1e-4, rtol=1e-4), "mismatch vs reference"

    # Case 2: batch not divisible by the tile -> 2 grid steps, partial last
    # block (no full-array padding of the embedding in HBM).
    B2 = 12
    embedding2 = jax.random.normal(k_emb2, (B2, L, D), dtype=jnp.float32)
    lengths2 = (jnp.arange(B2) % L) + 1
    attention_mask2 = jnp.arange(L)[None, :] < lengths2[:, None]    # bool (B2, L)

    out2 = jax.block_until_ready(
        attentive_pooling(embedding2, attention_mask2, w1, b1, w2, b2, block_b=8))
    ref2 = _reference(embedding2, attention_mask2, w1, b1, w2, b2)
    assert out2.shape == (B2, D)
    assert not bool(jnp.any(jnp.isnan(out2))), "NaN in kernel output (ragged)"
    assert jnp.allclose(out2, ref2, atol=1e-4, rtol=1e-4), "ragged mismatch vs reference"

    print("KERNEL_OK")
</pallas_src>

<mosaic_0001>
module attributes {stable_mosaic.version = 11 : i64} {
  func.func @_attentive_pool_kernel(%arg0: i32, %arg1: memref<4x8x128xf32, #tpu.memory_space<vmem>>, %arg2: memref<4x8xi32, #tpu.memory_space<vmem>>, %arg3: memref<128x32xf32, #tpu.memory_space<vmem>>, %arg4: memref<1x32xf32, #tpu.memory_space<vmem>>, %arg5: memref<1x32xf32, #tpu.memory_space<vmem>>, %arg6: memref<4x128xf32, #tpu.memory_space<vmem>>) attributes {dimension_semantics = [#tpu.dimension_semantics<parallel>], iteration_bounds = array<i64: 1>, scalar_prefetch = 0 : i64, scratch_operands = 0 : i64, tpu.core_type = #tpu.core_type<tc>, window_params = [{transform_indices = @transform_0, window_bounds = array<i64: 4, 8, 128>}, {transform_indices = @transform_1, window_bounds = array<i64: 4, 8>}, {pipeline_mode = #tpu.pipeline_mode<synchronous>, transform_indices = @transform_2, window_bounds = array<i64: 128, 32>}, {pipeline_mode = #tpu.pipeline_mode<synchronous>, transform_indices = @transform_3, window_bounds = array<i64: 1, 32>}, {pipeline_mode = #tpu.pipeline_mode<synchronous>, transform_indices = @transform_4, window_bounds = array<i64: 1, 32>}, {transform_indices = @transform_5, window_bounds = array<i64: 4, 128>}]} {
    %c0 = arith.constant 0 : index
    %c0_0 = arith.constant 0 : index
    %c0_1 = arith.constant 0 : index
    %0 = vector.load %arg1[%c0, %c0_0, %c0_1] : memref<4x8x128xf32, #tpu.memory_space<vmem>>, vector<4x8x128xf32>
    %1 = vector.shape_cast %0 : vector<4x8x128xf32> to vector<32x128xf32>
    %c0_2 = arith.constant 0 : index
    %c0_3 = arith.constant 0 : index
    %2 = vector.load %arg3[%c0_2, %c0_3] : memref<128x32xf32, #tpu.memory_space<vmem>>, vector<128x32xf32>
    %cst = arith.constant dense<0.000000e+00> : vector<32x32xf32>
    %3 = tpu.matmul %1, %2, %cst {dimension_numbers = #tpu.dot_dimension_numbers<[1], [0], [0], [1], [0, 0, 1, 1], [], []>} : vector<32x128xf32>, vector<128x32xf32>, vector<32x32xf32> -> vector<32x32xf32>
    %c0_4 = arith.constant 0 : index
    %c0_5 = arith.constant 0 : index
    %4 = vector.load %arg4[%c0_4, %c0_5] : memref<1x32xf32, #tpu.memory_space<vmem>>, vector<1x32xf32>
    %5 = vector.broadcast %4 : vector<1x32xf32> to vector<32x32xf32>
    %6 = arith.addf %3, %5 : vector<32x32xf32>
    %7 = math.tanh %6 : vector<32x32xf32>
    %c0_6 = arith.constant 0 : index
    %c0_7 = arith.constant 0 : index
    %8 = vector.load %arg5[%c0_6, %c0_7] : memref<1x32xf32, #tpu.memory_space<vmem>>, vector<1x32xf32>
    %9 = vector.broadcast %8 : vector<1x32xf32> to vector<32x32xf32>
    %10 = arith.mulf %7, %9 : vector<32x32xf32>
    %cst_8 = arith.constant dense<0.000000e+00> : vector<32xf32>
    %11 = vector.multi_reduction <add>, %10, %cst_8 [1] : vector<32x32xf32> to vector<32xf32>
    %12 = vector.shape_cast %11 : vector<32xf32> to vector<4x8xf32>
    %c0_9 = arith.constant 0 : index
    %c0_10 = arith.constant 0 : index
    %13 = vector.load %arg2[%c0_9, %c0_10] : memref<4x8xi32, #tpu.memory_space<vmem>>, vector<4x8xi32>
    %c0_i32 = arith.constant 0 : i32
    %14 = vector.broadcast %c0_i32 : i32 to vector<4x8xi32>
    %15 = arith.cmpi sgt, %13, %14 : vector<4x8xi32>
    %cst_11 = arith.constant 0xFF800000 : f32
    %16 = vector.broadcast %cst_11 : f32 to vector<4x8xf32>
    %17 = arith.select %15, %12, %16 : vector<4x8xi1>, vector<4x8xf32>
    %cst_12 = arith.constant dense<0xFF800000> : vector<4xf32>
    %18 = vector.multi_reduction <maximumf>, %17, %cst_12 [1] : vector<4x8xf32> to vector<4xf32>
    %19 = vector.shape_cast %18 : vector<4xf32> to vector<4x1xf32>
    %20 = vector.broadcast %19 : vector<4x1xf32> to vector<4x8xf32>
    %21 = arith.subf %17, %20 : vector<4x8xf32>
    %22 = math.exp %21 : vector<4x8xf32>
    %cst_13 = arith.constant dense<0.000000e+00> : vector<4xf32>
    %23 = vector.multi_reduction <add>, %22, %cst_13 [1] : vector<4x8xf32> to vector<4xf32>
    %24 = vector.shape_cast %23 : vector<4xf32> to vector<4x1xf32>
    %25 = vector.shape_cast %22 : vector<4x8xf32> to vector<4x8x1xf32>
    %26 = vector.broadcast %25 : vector<4x8x1xf32> to vector<4x8x128xf32>
    %27 = arith.mulf %26, %0 : vector<4x8x128xf32>
    %cst_14 = arith.constant dense<0.000000e+00> : vector<4x128xf32>
    %28 = vector.multi_reduction <add>, %27, %cst_14 [1] : vector<4x8x128xf32> to vector<4x128xf32>
    %29 = tpu.reciprocal %24 : vector<4x1xf32> -> vector<4x1xf32>
    %30 = vector.broadcast %29 : vector<4x1xf32> to vector<4x128xf32>
    %31 = arith.mulf %28, %30 : vector<4x128xf32>
    %c0_15 = arith.constant 0 : index
    %c0_16 = arith.constant 0 : index
    %32 = vector.load %arg6[%c0_15, %c0_16] : memref<4x128xf32, #tpu.memory_space<vmem>>, vector<4x128xf32>
    tpu.vector_store %arg6[%c0_15, %c0_16], %31 {strides = array<i32>} : memref<4x128xf32, #tpu.memory_space<vmem>>, vector<4x128xf32>,
    return
  }
  func.func @transform_0(%arg0: i32) -> (i32, i32, i32) {
    %c0_i32 = arith.constant 0 : i32
    %c0_i32_0 = arith.constant 0 : i32
    %c0_i32_1 = arith.constant 0 : i32
    return %arg0, %c0_i32, %c0_i32_0 : i32, i32, i32
  }
  func.func @transform_1(%arg0: i32) -> (i32, i32) {
    %c0_i32 = arith.constant 0 : i32
    %c0_i32_0 = arith.constant 0 : i32
    return %arg0, %c0_i32 : i32, i32
  }
  func.func @transform_2(%arg0: i32) -> (i32, i32) {
    %c0_i32 = arith.constant 0 : i32
    %c0_i32_0 = arith.constant 0 : i32
    %c0_i32_1 = arith.constant 0 : i32
    return %c0_i32, %c0_i32_0 : i32, i32
  }
  func.func @transform_3(%arg0: i32) -> (i32, i32) {
    %c0_i32 = arith.constant 0 : i32
    %c0_i32_0 = arith.constant 0 : i32
    %c0_i32_1 = arith.constant 0 : i32
    return %c0_i32, %c0_i32_0 : i32, i32
  }
  func.func @transform_4(%arg0: i32) -> (i32, i32) {
    %c0_i32 = arith.constant 0 : i32
    %c0_i32_0 = arith.constant 0 : i32
    %c0_i32_1 = arith.constant 0 : i32
    return %c0_i32, %c0_i32_0 : i32, i32
  }
  func.func @transform_5(%arg0: i32) -> (i32, i32) {
    %c0_i32 = arith.constant 0 : i32
    %c0_i32_0 = arith.constant 0 : i32
    return %arg0, %c0_i32 : i32, i32
  }
}

</mosaic_0001>

<bundles_post_ra>
// kernel: attentive_pooling.1
= control target key start
LH: loop header
LB: loop body
LE: loop exit
PB: predicated region body
PF: predicated region fallthrough
CT: control target
= control target key end

     0   :  { %s460_s0 = inlined_call_operand.vmem [shape: f32[4,8,128], index: 0, kind: input, shape index: {}]   ;;  %s461_s1 = inlined_call_operand.vmem [shape: s32[4,8], index: 1, kind: input, shape index: {}]   ;;  %s462_s2 = inlined_call_operand.vmem [shape: f32[128,32], index: 2, kind: input, shape index: {}]   ;;  %s463_s3 = inlined_call_operand.vmem [shape: f32[1,32], index: 3, kind: input, shape index: {}]   ;;  %s464_s4 = inlined_call_operand.vmem [shape: f32[1,32], index: 4, kind: input, shape index: {}]   ;;  %s465_s5 = inlined_call_operand.hbm [shape: f32[4,128], index: 5, kind: output, shape index: {}]  }
   0x1   :  { %v40_v0 = vld [vmem:[%s462_s2 + $0x78] sm:$0xff]  ;;  %v39_v1 = vld [vmem:[%s462_s2 + $0x70] sm:$0xff]  ;;  %v38_v2 = vld [vmem:[%s462_s2 + $0x68] sm:$0xff] }
   0x2   :  { %45 = vmatpush.msra.mxu0 %v40_v0  ;;  %240 = vmatpush.msra.mxu2 %v40_v0  ;;  %v37_v3 = vld [vmem:[%s462_s2 + $0x60] sm:$0xff]  ;;  %v36_v4 = vld [vmem:[%s462_s2 + $0x58] sm:$0xff] }
   0x3   :  { %239 = vmatpush.msra.mxu1 %v40_v0  ;;  %241 = vmatpush.msra.mxu3 %v40_v0 }
   0x4   :  { %46 = vmatpush.msra.mxu0 %v39_v1  ;;  %243 = vmatpush.msra.mxu2 %v39_v1 }
   0x5   :  { %242 = vmatpush.msra.mxu1 %v39_v1  ;;  %244 = vmatpush.msra.mxu3 %v39_v1 }
   0x6   :  { %47 = vmatpush.msra.mxu0 %v38_v2  ;;  %246 = vmatpush.msra.mxu2 %v38_v2 }
   0x7   :  { %245 = vmatpush.msra.mxu1 %v38_v2  ;;  %247 = vmatpush.msra.mxu3 %v38_v2 }
   0x8   :  { %48 = vmatpush.msra.mxu0 %v37_v3  ;;  %249 = vmatpush.msra.mxu2 %v37_v3 }
   0x9   :  { %10 = vsyncpa [#allocation3], 0  ;;  %v35_v5 = vld [vmem:[%s462_s2 + $0x50] sm:$0xff]  ;;  %248 = vmatpush.msra.mxu1 %v37_v3  ;;  %250 = vmatpush.msra.mxu3 %v37_v3  ;;  %v34_v6 = vld [vmem:[%s462_s2 + $0x48] sm:$0xff]  ;;  %vm86_vm0 = vcmask 261120   ;;  %v105_v43 = vlaneseq  ;;  %vm111_vm1 = vcmask 1041409  }
   0xa   :  { %49 = vmatpush.msra.mxu0 %v36_v4  ;;  %252 = vmatpush.msra.mxu2 %v36_v4  ;;  %v33_v7 = vld [vmem:[%s462_s2 + $0x40] sm:$0xff]  ;;  %v32_v8 = vld [vmem:[%s462_s2 + $0x38] sm:$0xff]  ;;  %v31_v9 = vld [vmem:[%s462_s2 + $0x30] sm:$0xff]  ;;  %vm113_vm2 = vcmask 1042434   ;;  %vm115_vm3 = vcmask 1043459   ;;  %vm119_vm5 = vcmask 60416  }
   0xb   :  { %251 = vmatpush.msra.mxu1 %v36_v4  ;;  %253 = vmatpush.msra.mxu3 %v36_v4  ;;  %v30_v10 = vld [vmem:[%s462_s2 + $0x28] sm:$0xff]  ;;  %v29_v11 = vld [vmem:[%s462_s2 + $0x20] sm:$0xff]  ;;  %v28_v12 = vld [vmem:[%s462_s2 + $0x18] sm:$0xff]  ;;  %v106_v45 = vand.u32 127, %v105_v43  ;;  %v131_v58 = vshrl.u32 %v105_v43, 7  ;;  %s230_s13 = sshll.u32 %s465_s5, 4  ;;  %s231_s13 = int_to_ptr.hbm [resolvable:$true] %s230_s13 }
   0xc   :  { %50 = vmatpush.msra.mxu0 %v35_v5  ;;  %255 = vmatpush.msra.mxu2 %v35_v5  ;;  %v27_v13 = vld [vmem:[%s462_s2 + $0x10] sm:$0xff]  ;;  %v26_v14 = vld [vmem:[%s462_s2 + $0x8] sm:$0xff]  ;;  %v25_v15 = vld [vmem:[%s462_s2] sm:$0xff] }
   0xd   :  { %254 = vmatpush.msra.mxu1 %v35_v5  ;;  %256 = vmatpush.msra.mxu3 %v35_v5  ;;  %v413_v16 = vld [vmem:[%s460_s0] sm:$0xff]  ;;  %v418_v17 = vld [vmem:[%s460_s0 + $0x10] sm:$0xff]  ;;  %v423_v18 = vld [vmem:[%s460_s0 + $0x8] sm:$0xff] }
   0xe   :  { %51 = vmatpush.msra.mxu0 %v34_v6  ;;  %258 = vmatpush.msra.mxu2 %v34_v6  ;;  %v428_v19 = vld [vmem:[%s460_s0 + $0x18] sm:$0xff]  ;;  %v291_v20 = vld [vmem:[%s463_s3] ss:$0 sm:$0xff] }
   0xf   :  { %257 = vmatpush.msra.mxu1 %v34_v6  ;;  %259 = vmatpush.msra.mxu3 %v34_v6  ;;  %v292_v26 = vld [vmem:[%s464_s4] ss:$0 sm:$0xff] }
  0x10   :  { %52 = vmatpush.msra.mxu0 %v33_v7  ;;  %261 = vmatpush.msra.mxu2 %v33_v7  ;;  %v99_v49 = vld [vmem:[%s461_s1] sm:$0xf]  ;;  %s331_s1 = smov [#allocation2]  }
  0x11   :  { %260 = vmatpush.msra.mxu1 %v33_v7  ;;  %262 = vmatpush.msra.mxu3 %v33_v7  ;;  %vm100_vm4 = vcmp.gt.s32.totalorder %v99_v49, 0  ;;  %s228_s10 = sshll.u32 %s331_s1, 4  ;;  %s229_s10 = int_to_ptr.vmem [resolvable:$true] %s228_s10 }
  0x12   :  { %53 = vmatpush.msra.mxu0 %v32_v8  ;;  %264 = vmatpush.msra.mxu2 %v32_v8 }
  0x13   :  { %263 = vmatpush.msra.mxu1 %v32_v8  ;;  %265 = vmatpush.msra.mxu3 %v32_v8 }
  0x14   :  { %54 = vmatpush.msra.mxu0 %v31_v9  ;;  %267 = vmatpush.msra.mxu2 %v31_v9 }
  0x15   :  { %266 = vmatpush.msra.mxu1 %v31_v9  ;;  %268 = vmatpush.msra.mxu3 %v31_v9 }
  0x16   :  { %55 = vmatpush.msra.mxu0 %v30_v10  ;;  %270 = vmatpush.msra.mxu2 %v30_v10 }
  0x17   :  { %269 = vmatpush.msra.mxu1 %v30_v10  ;;  %271 = vmatpush.msra.mxu3 %v30_v10 }
  0x18   :  { %56 = vmatpush.msra.mxu0 %v29_v11  ;;  %273 = vmatpush.msra.mxu2 %v29_v11 }
  0x19   :  { %272 = vmatpush.msra.mxu1 %v29_v11  ;;  %274 = vmatpush.msra.mxu3 %v29_v11 }
  0x1a   :  { %57 = vmatpush.msra.mxu0 %v28_v12  ;;  %276 = vmatpush.msra.mxu2 %v28_v12 }
  0x1b   :  { %275 = vmatpush.msra.mxu1 %v28_v12  ;;  %277 = vmatpush.msra.mxu3 %v28_v12 }
  0x1c   :  { %58 = vmatpush.msra.mxu0 %v27_v13  ;;  %279 = vmatpush.msra.mxu2 %v27_v13 }
  0x1d   :  { %278 = vmatpush.msra.mxu1 %v27_v13  ;;  %280 = vmatpush.msra.mxu3 %v27_v13 }
  0x1e   :  { %59 = vmatpush.msra.mxu0 %v26_v14  ;;  %282 = vmatpush.msra.mxu2 %v26_v14 }
  0x1f   :  { %281 = vmatpush.msra.mxu1 %v26_v14  ;;  %283 = vmatpush.msra.mxu3 %v26_v14 }
  0x20   :  { %60 = vmatpush.msra.mxu0 %v25_v15  ;;  %285 = vmatpush.msra.mxu2 %v25_v15 }
  0x21   :  { %61 = vmatmul.f32.vlgmr.msra.gmra.mxu0 %v413_v16  ;;  %67 = vmatmul.f32.vlgmr.msra.gmra.mxu2 %v418_v17 }
  0x22   :  { %284 = vmatpush.msra.mxu1 %v25_v15  ;;  %286 = vmatpush.msra.mxu3 %v25_v15 }
  0x23   :  { %64 = vmatmul.f32.vlgmr.msra.gmra.mxu1 %v423_v18  ;;  %70 = vmatmul.f32.vlgmr.msra.gmra.mxu3 %v428_v19 }
  0x24   :  { %289 = vset.pattern.permute.xlu1 %v131_v58  ;;  %288 = vset.pattern.permute.xlu0 %v131_v58 }
  0x25   :  { %290 = vset.pattern.permute.xlu2 %v131_v58 }
  0x9e   :  { %v62_v21 = vpop.f32.mrf.mxu0 }
  0x9f   :  { %v63_v22 = vadd.f32 %v291_v20, %v62_v21 }
  0xa0   :  { %v65_v23 = vpop.f32.mrf.mxu1 }
  0xa1   :  { %293 = vtanh.f32 %v63_v22  ;;  %v66_v24 = vadd.f32 %v291_v20, %v65_v23 }
  0xa3   :  { %295 = vtanh.f32 %v66_v24 }
  0xa4   :  { %v68_v25 = vpop.f32.mrf.mxu2 }
  0xa5   :  { %v69_v27 = vadd.f32 %v291_v20, %v68_v25 }
  0xa6   :  { %v71_v28 = vpop.f32.mrf.mxu3 }
  0xa7   :  { %v294_v29 = vpop.eup %293  ;;  %297 = vtanh.f32 %v69_v27  ;;  %v72_v30 = vadd.f32 %v291_v20, %v71_v28 }
  0xa8   :  { %v82_v31 = vmul.f32 %v294_v29, %v292_v26 }
  0xa9   :  { %v296_v32 = vpop.eup %295  ;;  %299 = vtanh.f32 %v72_v30 }
  0xaa   :  { %v87_v33 = vsel %vm86_vm0, %v82_v31, 0.0  ;;  %v83_v34 = vmul.f32 %v296_v32, %v292_v26 }
  0xab   :  { %88 = vadd.xlane.f32.xlu0 %v87_v33 }
  0xac   :  { %v90_v39 = vsel %vm86_vm0, %v83_v34, 0.0 }
  0xad   :  { %v298_v35 = vpop.eup %297 }
  0xae   :  { %v84_v36 = vmul.f32 %v298_v35, %v292_v26 }
  0xaf   :  { %v300_v37 = vpop.eup %299 }
  0xb0   :  { %v93_v38 = vsel %vm86_vm0, %v84_v36, 0.0  ;;  %v85_v40 = vmul.f32 %v300_v37, %v292_v26 }
  0xb1   :  { %94 = vadd.xlane.f32.xlu1 %v93_v38 }
  0xb2   :  { %v96_v41 = vsel %vm86_vm0, %v85_v40, 0.0 }
  0xb3   :  { %91 = vadd.xlane.f32.xlu0 %v90_v39 }
  0xb9   :  { %97 = vadd.xlane.f32.xlu1 %v96_v41 }
 0x11e   :  { %v89_v42 = vpop.xlane.xlu0 %88 }
 0x11f   :  { %v107_v48 = vperm.slane %v89_v42, %v106_v45 }
 0x124   :  { %v95_v44 = vpop.xlane.xlu1 %94 }
 0x125   :  { %v109_v51 = vperm.slane %v95_v44, %v106_v45 }
 0x126   :  { %v92_v46 = vpop.xlane.xlu0 %91 }
 0x127   :  { %v108_v47 = vperm.slane %v92_v46, %v106_v45 }
 0x129   :  { %v112_v50 = vsel %vm111_vm1, %v108_v47, %v107_v48 }
 0x12a   :  { %v114_v54 = vsel %vm113_vm2, %v109_v51, %v112_v50 }
 0x12c   :  { %v98_v52 = vpop.xlane.xlu1 %97 }
 0x12d   :  { %v110_v53 = vperm.slane %v98_v52, %v106_v45 }
 0x12f   :  { %v116_v55 = vsel %vm115_vm3, %v110_v53, %v114_v54 }
 0x130   :  { %v118_v56 = vsel %vm100_vm4, %v116_v55, -inf }
 0x131   :  { %v120_v57 = vsel %vm119_vm5, %v118_v56, -inf }
 0x132   :  { %121 = vmax.xlane.f32.xlu2 %v120_v57 }
 0x1a5   :  { %v122_v59 = vpop.xlane.xlu2 %121 }
 0x1a6   :  { %v123_v60 = vsub.f32 %v118_v56, %v122_v59 }
 0x1a8   :  { %v124_v61 = vmul.f32 1.442695, %v123_v60 }
 0x1aa   :  { %301 = vpow2.f32 %v124_v61 }
 0x1b0   :  { %v302_v62 = vpop.eup %301 }
 0x1b1   :  { %v126_v63 = vsel %vm119_vm5, %v302_v62, 0.0  ;;  %v143_v0 = vperm.slane %v302_v62, 2  ;;  %v136_v1 = vperm.slane %v302_v62, 1  ;;  %v129_v2 = vperm.slane %v302_v62, 0 }
 0x1b2   :  { %127 = vadd.xlane.f32.xlu2 %v126_v63  ;;  %v150_v3 = vperm.slane %v302_v62, 3 }
 0x1b3   :  { %148 = vperm.xlu1 %289, %v143_v0   ;;  %141 = vperm.xlu0 %288, %v136_v1  }
 0x1ca   :  { %134 = vperm.xlu2 %290, %v129_v2  }
 0x1d2   :  { %155 = vperm.xlu2 %290, %v150_v3  }
 0x225   :  { %v149_v4 = vpop.permute.xlu1 %148  ;;  %v142_v5 = vpop.permute.xlu0 %141 }
 0x226   :  { %v158_v6 = vmul.f32 %v142_v5, %v423_v18  ;;  %v128_v7 = vpop.xlane.xlu2 %127  ;;  %v159_v8 = vmul.f32 %v149_v4, %v418_v17 }
 0x227   :  { %303 = vrcp.f32 %v128_v7  ;;  %v196_v23 = vand.u32 2147483648, %v128_v7  ;;  %v194_v18 = vand.u32 2147483647, %v128_v7  ;;  %vm190_vm7 = vweird.f32 %v128_v7 }
 0x228   :  { %v167_v9 = vrot.slane %v158_v6, 4  ;;  %v173_v11 = vrot.slane %v159_v8, 4 }
 0x229   :  { %v197_v29 = vor.u32 1.1754944e-38, %v196_v23  ;;  %vm195_vm9 = vcmp.eq.f32.partialorder %v194_v18, 8.507059e+37 }
 0x22a   :  { %v168_v10 = vadd.f32 %v167_v9, %v158_v6  ;;  %v174_v21 = vadd.f32 %v173_v11, %v159_v8 }
 0x22c   :  { %v169_v15 = vrot.slane %v168_v10, 2  ;;  %v175_v28 = vrot.slane %v174_v21, 2 }
 0x22d   :  { %v304_v12 = vpop.eup %303 }
 0x22e   :  { %v186_v13 = vmul.f32 %v304_v12, %v128_v7  ;;  %v135_v14 = vpop.permute.xlu2 %134  ;;  %vm191_vm6 = vweird.f32 %v304_v12  ;;  %v170_v26 = vadd.f32 %v169_v15, %v168_v10  ;;  %v176_v36 = vadd.f32 %v175_v28, %v174_v21 }
 0x22f   :  { %v157_v20 = vmul.f32 %v135_v14, %v413_v16  ;;  %vm192_vm8 = vmor %vm190_vm7, %vm191_vm6 }
 0x230   :  { %v187_v22 = vsub.f32 1.0, %v186_v13  ;;  %v171_v33 = vrot.slane %v170_v26, 1  ;;  %v177_v42 = vrot.slane %v176_v36, 1 }
 0x231   :  { %v161_v24 = vrot.slane %v157_v20, 4 }
 0x232   :  { %v188_v25 = vmul.f32 %v304_v12, %v187_v22  ;;  %v172_v40 = vadd.f32 %v171_v33, %v170_v26  ;;  %v178_v48 = vadd.f32 %v177_v42, %v176_v36 }
 0x233   :  { %v162_v27 = vadd.f32 %v161_v24, %v157_v20 }
 0x234   :  { %v189_v17 = vadd.f32 %v304_v12, %v188_v25 }
 0x235   :  { %v163_v30 = vrot.slane %v162_v27, 2 }
 0x236   :  { %v193_v31 = vsel %vm192_vm8, %v304_v12, %v189_v17  ;;  %v156_v32 = vpop.permute.xlu2 %155 }
 0x237   :  { %v198_v16 = vsel %vm195_vm9, %v197_v29, %v193_v31  ;;  %v164_v34 = vadd.f32 %v163_v30, %v162_v27  ;;  %v160_v35 = vmul.f32 %v156_v32, %v428_v19 }
 0x238   :  { %v200_v39 = vrot.slane %v198_v16, 1  ;;  %v201_v46 = vrot.slane %v198_v16, 2  ;;  %v202_v53 = vrot.slane %v198_v16, 3 }
 0x239   :  { %v165_v37 = vrot.slane %v164_v34, 1  ;;  %v179_v38 = vrot.slane %v160_v35, 4 }
 0x23a   :  { %v208_v45 = vmul.f32 %v200_v39, %v172_v40  ;;  %v209_v52 = vmul.f32 %v201_v46, %v178_v48 }
 0x23b   :  { %v180_v41 = vadd.f32 %v179_v38, %v160_v35  ;;  %v166_v43 = vadd.f32 %v165_v37, %v164_v34 }
 0x23c   :  { %v215_v51 = vrot.slane %v208_v45, 7  ;;  %v217_v56 = vrot.slane %v209_v52, 6 }
 0x23d   :  { %v181_v44 = vrot.slane %v180_v41, 2  ;;  %v207_v49 = vmul.f32 %v198_v16, %v166_v43 }
 0x23f   :  { %v182_v47 = vadd.f32 %v181_v44, %v180_v41  ;;  %v216_v55 = vsel %vm111_vm1, %v215_v51, %v207_v49 }
 0x240   :  { %v218_v58 = vsel %vm113_vm2, %v217_v56, %v216_v55 }
 0x241   :  { %v183_v50 = vrot.slane %v182_v47, 1 }
 0x243   :  { %v184_v54 = vadd.f32 %v183_v50, %v182_v47 }
 0x245   :  { %v210_v19 = vmul.f32 %v202_v53, %v184_v54 }
 0x247   :  { %v219_v57 = vrot.slane %v210_v19, 5 }
 0x249   :  { %v220_v59 = vsel %vm115_vm3, %v219_v57, %v218_v58 }
 0x24a   :  { %222 = vst [vmem:[#allocation2] sm:$0xf] %v220_v59 }
 0x24b   :  { %233 = dma.vmem_to_hbm [thread:$0]  %s229_s10, 64, %s231_s13, [#allocation3]  }
 0x24c   :  { %329 = dma.done.wait [#allocation3], 64  }
 0x24d   :  { %330 = vsyncadd [#allocation3], 4294967232 }
 0x24e   :  { %238 = vsyncpa [#allocation3], 1 }

</bundles_post_ra>
